<compile_context>
chip_gen: v7x
topology: tpu7x:2x2x1
jax: 0.10.0
libtpu: 0.0.40
codegen_flags: <defaults>
</compile_context>

<pallas_src>
import functools

import jax
import jax.numpy as jnp
from jax.experimental import pallas as pl
from jax.experimental.pallas import tpu as pltpu

_LANES = 128
# Caps the input block at 8192 x 128 rows: 2 MiB (bf16) / 4 MiB (f32) per block,
# i.e. well past the ~85% HBM-roofline knee while staying far below VMEM limits.
_MAX_TILE_ROWS = 8192


def _cdiv(a, b):
    return -(-a // b)


def _round_up(v, m):
    return _cdiv(v, m) * m


def _round_down(v, m):
    return (v // m) * m


def _vmem_capacity_bytes() -> int:
    """Physical VMEM of the current chip; fall back to the smallest (v7x, 64 MiB/TC)."""
    try:
        cap = getattr(pltpu.get_tpu_info(), "vmem_capacity_bytes", None)
        if cap:
            return int(cap)
    except Exception:
        pass
    return 64 * 1024 * 1024


def _rmsnorm_kernel_mxu(x_ref, w_ref, seg_ref, o_ref, *, eps: float):
    """One (T, 128) tile.  `seg` is a resident block-diagonal matrix whose
    non-zero entries are 1/C, so `xx @ seg` gives every lane the mean-of-squares
    of its own group, already broadcast across the group's lanes.  The reduce
    runs on the otherwise-idle MXU instead of the VPU/XLU."""
    x = x_ref[...].astype(jnp.float32)
    w = w_ref[...].astype(jnp.float32)
    ms = jnp.dot(x * x, seg_ref[...], preferred_element_type=jnp.float32)
    inv = jax.lax.rsqrt(ms + eps)                    # EUP rsqrt
    o_ref[...] = (x * inv * w).astype(o_ref.dtype)


def _rmsnorm_kernel_mean(x_ref, w_ref, o_ref, *, eps: float):
    """Generic path (lane width != 128): plain per-row mean over the last axis.
    Note: no channel padding is ever introduced here, so mean (not sum/C over a
    padded width) is exact."""
    x = x_ref[...].astype(jnp.float32)
    w = w_ref[...].astype(jnp.float32)
    ms = jnp.mean(x * x, axis=-1, keepdims=True)
    inv = jax.lax.rsqrt(ms + eps)
    o_ref[...] = (x * inv * w).astype(o_ref.dtype)


def _choose_tile_rows(rows: int, lane_width: int, itemsize: int, budget: int) -> int:
    """VMEM-budgeted, sublane-aligned row tile for the (rows, lane_width) slab."""
    # Sublane packing: 8 rows/vreg at 32-bit, 16 at 16-bit, 32 at 8-bit.
    row_align = max(8, 32 // max(1, itemsize))
    if rows <= row_align:
        # Tiny input: one full-extent block (legal via the "equals array dim" rule).
        return rows
    # Conservative per-row VMEM cost: double-buffered input + output blocks plus
    # ~4 full-tile f32 temporaries that Mosaic may materialize in the body.
    per_row = lane_width * (4 * itemsize + 16)
    t_max = max(row_align,
                min(_MAX_TILE_ROWS, _round_down(budget // per_row, row_align)))
    # Aim for >= 4 grid steps when rows allow: 2 blocks per v7x TensorCore keeps
    # each core's prefetch/writeback pipeline alive (no effect on v5e/v6e cost —
    # the extra per-step overhead is ~0.35 us).
    min_steps = 4 if rows >= 4 * row_align else _cdiv(rows, row_align)
    n_steps = max(_cdiv(rows, t_max), min_steps)
    return min(t_max, _round_up(_cdiv(rows, n_steps), row_align))


def fast_rms_norm(x: jax.Array, weight: jax.Array, eps: float = 1e-6) -> jax.Array:
    """RMSNorm over the last axis of x, computed in f32, returned in x.dtype."""
    C = x.shape[-1]
    assert weight.shape == (C,)
    orig_shape = x.shape
    out_dtype = x.dtype

    x2 = x.reshape(-1, C)                  # (N, C), contiguous
    N = x2.shape[0]

    # Lane-dense packing: if C divides 128, view `pack` consecutive logical rows
    # as one 128-lane physical row (a free reshape of the contiguous slab).
    pack = _LANES // C if (C < _LANES and _LANES % C == 0) else 1
    lane_width = pack * C

    n_pad = (-N) % pack
    if n_pad:
        # Rare case (N not a multiple of pack): a tiny pad keeps lane-dense I/O.
        # Zero rows are harmless: rsqrt(0 + eps) is finite and 0 * inv * w == 0.
        x2 = jnp.pad(x2, ((0, n_pad), (0, 0)))
    rows = (N + n_pad) // pack
    xp = x2.reshape(rows, lane_width)

    w2 = (jnp.tile(weight, pack) if pack > 1 else weight).reshape(1, lane_width)

    itemsize = jnp.dtype(x.dtype).itemsize
    vmem_cap = _vmem_capacity_bytes()
    # Scoped VMEM limit: 3/4 of physical (48 MiB on v7x, 96 MiB on v5e/v6e).
    vmem_limit = min(vmem_cap * 3 // 4, 112 * 1024 * 1024)
    # Tile budget with extra headroom for f32-temp under-estimation.
    tile_budget = (vmem_limit * 3) // 4
    tile_rows = _choose_tile_rows(rows, lane_width, itemsize, tile_budget)

    # No padding of rows to a multiple of tile_rows: Pallas clips the boundary
    # block (reads of the out-of-range tail are garbage, but rows are independent
    # and the tail's stores are dropped), so HBM traffic stays at the minimum.
    grid = (_cdiv(rows, tile_rows),)

    use_mxu = (lane_width == _LANES)
    if use_mxu:
        # Host-precomputed segmented-reduction matrix with 1/C folded in:
        # seg[i, j] = 1/C if i//C == j//C else 0.  64 KiB resident in VMEM.
        gi = jnp.arange(lane_width, dtype=jnp.int32)[:, None] // C
        gj = jnp.arange(lane_width, dtype=jnp.int32)[None, :] // C
        seg = jnp.where(gi == gj, jnp.float32(1.0 / C), jnp.float32(0.0))
        kernel = functools.partial(_rmsnorm_kernel_mxu, eps=eps)
        in_specs = [
            pl.BlockSpec((tile_rows, lane_width), lambda i: (i, 0)),
            pl.BlockSpec((1, lane_width), lambda i: (0, 0)),            # resident weight
            pl.BlockSpec((lane_width, lane_width), lambda i: (0, 0)),   # resident seg
        ]
        args = (xp, w2, seg)
    else:
        kernel = functools.partial(_rmsnorm_kernel_mean, eps=eps)
        in_specs = [
            pl.BlockSpec((tile_rows, lane_width), lambda i: (i, 0)),
            pl.BlockSpec((1, lane_width), lambda i: (0, 0)),
        ]
        args = (xp, w2)

    out = pl.pallas_call(
        kernel,
        out_shape=jax.ShapeDtypeStruct((rows, lane_width), out_dtype),
        grid_spec=pltpu.PrefetchScalarGridSpec(
            num_scalar_prefetch=0,
            grid=grid,
            in_specs=in_specs,
            out_specs=pl.BlockSpec((tile_rows, lane_width), lambda i: (i, 0)),
        ),
        compiler_params=pltpu.CompilerParams(
            dimension_semantics=("parallel",),
            vmem_limit_bytes=int(vmem_limit),
        ),
    )(*args)

    out = out.reshape(rows * pack, C)
    if n_pad:
        out = out[:N]
    return out.reshape(orig_shape)


def _reference(x, weight, eps):
    xf = x.astype(jnp.float32)
    ms = jnp.mean(xf * xf, axis=-1, keepdims=True)
    return (xf * jax.lax.rsqrt(ms + eps) * weight.astype(jnp.float32)).astype(x.dtype)


if __name__ == "__main__":
    eps = 1e-6
    root = jax.random.PRNGKey(0)
    keys = jax.random.split(root, 4)

    def run_case(key, shape, dtype, tol):
        C = shape[-1]
        weight = jnp.ones((C,), dtype=jnp.float32)   # module __init__: weight = ones(C)
        x = jax.random.normal(key, shape, dtype=jnp.float32).astype(dtype)
        y = jax.block_until_ready(fast_rms_norm(x, weight, eps=eps))
        y_ref = _reference(x, weight, eps)
        assert y.shape == x.shape and y.dtype == x.dtype
        assert jnp.allclose(y.astype(jnp.float32), y_ref.astype(jnp.float32),
                            atol=tol, rtol=tol), f"mismatch for shape={shape} dtype={dtype}"

    # Case 1: token stream (B, L, C) with C=32 — lane-dense packed MXU path (pack=4).
    run_case(keys[0], (2, 8, 32), jnp.bfloat16, 1e-2)

    # Case 2: C == 128 — pack==1 MXU-reduce path.
    run_case(keys[1], (2, 8, 128), jnp.bfloat16, 1e-2)

    # Case 3: N not a multiple of pack — exercises the rare tiny-pad fallback.
    run_case(keys[2], (3, 7, 32), jnp.float32, 1e-2)

    # Case 4: rows not a multiple of tile_rows — exercises boundary-block clipping
    # (multi-step grid, clipped tail) with f32 inputs.
    run_case(keys[3], (1, 100, 128), jnp.float32, 1e-2)

    print("KERNEL_OK")
</pallas_src>

<mosaic_0001>
module attributes {stable_mosaic.version = 11 : i64} {
  func.func @_rmsnorm_kernel_mxu(%arg0: i32, %arg1: memref<4x128xbf16, #tpu.memory_space<vmem>>, %arg2: memref<1x128xf32, #tpu.memory_space<vmem>>, %arg3: memref<128x128xf32, #tpu.memory_space<vmem>>, %arg4: memref<4x128xbf16, #tpu.memory_space<vmem>>) attributes {dimension_semantics = [#tpu.dimension_semantics<parallel>], iteration_bounds = array<i64: 1>, scalar_prefetch = 0 : i64, scratch_operands = 0 : i64, tpu.core_type = #tpu.core_type<tc>, window_params = [{transform_indices = @transform_0, window_bounds = array<i64: 4, 128>}, {pipeline_mode = #tpu.pipeline_mode<synchronous>, transform_indices = @transform_1, window_bounds = array<i64: 1, 128>}, {pipeline_mode = #tpu.pipeline_mode<synchronous>, transform_indices = @transform_2, window_bounds = array<i64: 128, 128>}, {transform_indices = @transform_3, window_bounds = array<i64: 4, 128>}]} {
    %c0 = arith.constant 0 : index
    %c0_0 = arith.constant 0 : index
    %0 = vector.load %arg1[%c0, %c0_0] : memref<4x128xbf16, #tpu.memory_space<vmem>>, vector<4x128xbf16>
    %1 = arith.extf %0 : vector<4x128xbf16> to vector<4x128xf32>
    %c0_1 = arith.constant 0 : index
    %c0_2 = arith.constant 0 : index
    %2 = vector.load %arg2[%c0_1, %c0_2] : memref<1x128xf32, #tpu.memory_space<vmem>>, vector<1x128xf32>
    %3 = arith.mulf %1, %1 : vector<4x128xf32>
    %c0_3 = arith.constant 0 : index
    %c0_4 = arith.constant 0 : index
    %4 = vector.load %arg3[%c0_3, %c0_4] : memref<128x128xf32, #tpu.memory_space<vmem>>, vector<128x128xf32>
    %cst = arith.constant dense<0.000000e+00> : vector<4x128xf32>
    %5 = tpu.matmul %3, %4, %cst {dimension_numbers = #tpu.dot_dimension_numbers<[1], [0], [0], [1], [0, 0, 1, 1], [], []>} : vector<4x128xf32>, vector<128x128xf32>, vector<4x128xf32> -> vector<4x128xf32>
    %cst_5 = arith.constant 9.99999997E-7 : f32
    %6 = vector.broadcast %cst_5 : f32 to vector<4x128xf32>
    %7 = arith.addf %5, %6 : vector<4x128xf32>
    %8 = math.rsqrt %7 : vector<4x128xf32>
    %9 = arith.mulf %1, %8 : vector<4x128xf32>
    %10 = vector.broadcast %2 : vector<1x128xf32> to vector<4x128xf32>
    %11 = arith.mulf %9, %10 : vector<4x128xf32>
    %12 = arith.truncf %11 : vector<4x128xf32> to vector<4x128xbf16>
    %c0_6 = arith.constant 0 : index
    %c0_7 = arith.constant 0 : index
    %13 = vector.load %arg4[%c0_6, %c0_7] : memref<4x128xbf16, #tpu.memory_space<vmem>>, vector<4x128xbf16>
    tpu.vector_store %arg4[%c0_6, %c0_7], %12 {strides = array<i32>} : memref<4x128xbf16, #tpu.memory_space<vmem>>, vector<4x128xbf16>,
    return
  }
  func.func @transform_0(%arg0: i32) -> (i32, i32) {
    %c0_i32 = arith.constant 0 : i32
    %c0_i32_0 = arith.constant 0 : i32
    return %arg0, %c0_i32 : i32, i32
  }
  func.func @transform_1(%arg0: i32) -> (i32, i32) {
    %c0_i32 = arith.constant 0 : i32
    %c0_i32_0 = arith.constant 0 : i32
    %c0_i32_1 = arith.constant 0 : i32
    return %c0_i32, %c0_i32_0 : i32, i32
  }
  func.func @transform_2(%arg0: i32) -> (i32, i32) {
    %c0_i32 = arith.constant 0 : i32
    %c0_i32_0 = arith.constant 0 : i32
    %c0_i32_1 = arith.constant 0 : i32
    return %c0_i32, %c0_i32_0 : i32, i32
  }
  func.func @transform_3(%arg0: i32) -> (i32, i32) {
    %c0_i32 = arith.constant 0 : i32
    %c0_i32_0 = arith.constant 0 : i32
    return %arg0, %c0_i32 : i32, i32
  }
}

</mosaic_0001>

<bundles_post_ra>
// kernel: tpu_custom_call.1
= control target key start
LH: loop header
LB: loop body
LE: loop exit
PB: predicated region body
PF: predicated region fallthrough
CT: control target
= control target key end

     0   :  { %8 = vsyncpa [#allocation3], 0  ;;  %s391_s0 = inlined_call_operand.hbm [shape: bf16[4,128], index: 0, kind: input, shape index: {}]   ;;  %s392_s1 = inlined_call_operand.vmem [shape: f32[1,128], index: 1, kind: input, shape index: {}]   ;;  %s393_s2 = inlined_call_operand.hbm [shape: f32[128,128], index: 2, kind: input, shape index: {}]   ;;  %s394_s3 = inlined_call_operand.hbm [shape: bf16[4,128], index: 3, kind: output, shape index: {}]  }
   0x1   :  { %9 = vsyncpa [#allocation6], 0 }
   0x2   :  { %10 = vsyncpa [#allocation4], 0  ;;  %s317_s12 = smov [#allocation2]   ;;  %s318_s14 = smov [#allocation5]  }
   0x3   :  { %s17_s13 = sshll.u32 %s317_s12, 4  ;;  %s28_s15 = sshll.u32 %s318_s14, 4  ;;  %s18_s13 = int_to_ptr.vmem [resolvable:$true] %s17_s13  ;;  %s345_s15 = int_to_ptr.vmem [resolvable:$true] %s28_s15 }
   0x4   :  { %s245_s18 = scalar_lea.hbm %s391_s0, 32 }
   0x5   :  { %p246_p0 = scmp.ne.s32.totalorder %s391_s0, %s245_s18  ;;  %p249_p1 = scmp.lt.u32.totalorder %s245_s18, %s391_s0 }
   0x7   :  { %p251_p2 = pnand %p249_p1, %p246_p0 }
   0x9   :  { %254 = shalt.err (!%p251_p2)
}
   0xa   :  { %s255_s23 = scalar_lea.vmem %s18_s13, 32  ;;  %p260_p4 = scmp.lt.s32.totalorder %s18_s13, %s18_s13 }
   0xb   :  { %p256_p3 = scmp.ne.s32.totalorder %s18_s13, %s255_s23  ;;  %p261_p5 = scmp.lt.s32.totalorder %s255_s23, %s255_s23 }
   0xd   :  { %p262_p6 = por %p261_p5, %p260_p4 }
   0xf   :  { %p263_p7 = pnand %p262_p6, %p256_p3 }
  0x11   :  { %266 = shalt.err (!%p263_p7)
}
  0x12   :  { %20 = dma.hbm_to_vmem [thread:$0]  %s391_s0, 32, %s18_s13, [#allocation3]  }
  0x13   :  { %s267_s28 = scalar_lea.hbm %s393_s2, 2048 }
  0x14   :  { %p268_p8 = scmp.ne.s32.totalorder %s393_s2, %s267_s28  ;;  %p271_p9 = scmp.lt.u32.totalorder %s267_s28, %s393_s2 }
  0x16   :  { %p273_p10 = pnand %p271_p9, %p268_p8 }
  0x18   :  { %276 = shalt.err (!%p273_p10)
}
  0x19   :  { %s277_s6 = scalar_lea.vmem %s345_s15, 2048  ;;  %p282_p12 = scmp.lt.s32.totalorder %s345_s15, %s345_s15 }
  0x1a   :  { %p278_p11 = scmp.ne.s32.totalorder %s345_s15, %s277_s6  ;;  %p283_p13 = scmp.lt.s32.totalorder %s277_s6, %s277_s6 }
  0x1c   :  { %p284_p0 = por %p283_p13, %p282_p12 }
  0x1e   :  { %p285_p1 = pnand %p284_p0, %p278_p11 }
  0x20   :  { %288 = shalt.err (!%p285_p1)
}
  0x21   :  { %s319_s0 = smov 128   ;;  %s320_s7 = smov 8  }
  0x22   :  { %34 = dma.hbm_to_vmem [thread:$0]  %s393_s2, 2048, %s345_s15, [#allocation6], %s319_s0, %s319_s0, %s320_s7  }
  0x23   :  { %311 = dma.done.wait [#allocation3], 32  }
  0x24   :  { %312 = vsyncadd [#allocation3], 4294967264 }
  0x25   :  { %313 = dma.done.wait [#allocation6], 2048  }
  0x26   :  { %314 = vsyncadd [#allocation6], 4294965248  ;;  %v321_v0 = vmov 0.0|0.0   ;;  %vm322_vm0 = vmmov 0   ;;  %v323_v1 = vmov 0.0   ;;  %v45_v2 = vld [vmem:[#allocation5] sm:$0xff] }
  0x27   :  { %211 = vmatprep.subr.bf16.mxu0 %v321_v0  ;;  %208 = vmatprep.mubr.msk.f32.mxu0 %vm322_vm0, %v323_v1  ;;  %v46_v3 = vld [vmem:[#allocation5 + $0x8] sm:$0xff]  ;;  %v47_v4 = vld [vmem:[#allocation5 + $0x10] sm:$0xff]  ;;  %v48_v6 = vld [vmem:[#allocation5 + $0x18] sm:$0xff]  ;;  %s324_s11 = smov [#allocation7]  }
  0x28   :  { %v212_v5 = vpack.c.bf16 %v46_v3, %v45_v2  ;;  %v215_v7 = vpack.c.bf16 %v48_v6, %v47_v4  ;;  %v49_v8 = vld [vmem:[#allocation5 + $0x20] sm:$0xff]  ;;  %v50_v9 = vld [vmem:[#allocation5 + $0x28] sm:$0xff]  ;;  %v51_v11 = vld [vmem:[#allocation5 + $0x30] sm:$0xff]  ;;  %s148_s12 = sshll.u32 %s324_s11, 4  ;;  %s149_s12 = int_to_ptr.vmem [resolvable:$true] %s148_s12 }
  0x29   :  { %v218_v10 = vpack.c.bf16 %v50_v9, %v49_v8  ;;  %v52_v12 = vld [vmem:[#allocation5 + $0x38] sm:$0xff]  ;;  %v53_v14 = vld [vmem:[#allocation5 + $0x40] sm:$0xff]  ;;  %v54_v15 = vld [vmem:[#allocation5 + $0x48] sm:$0xff]  ;;  %s289_s13 = scalar_lea.vmem %s149_s12, 32  ;;  %p294_p3 = scmp.lt.s32.totalorder %s149_s12, %s149_s12 }
  0x2a   :  { %213 = vmatpush3.bf16.msra.mxu0 %v212_v5  ;;  %v221_v13 = vpack.c.bf16 %v52_v12, %v51_v11  ;;  %v224_v16 = vpack.c.bf16 %v54_v15, %v53_v14  ;;  %v55_v17 = vld [vmem:[#allocation5 + $0x50] sm:$0xff]  ;;  %v56_v18 = vld [vmem:[#allocation5 + $0x58] sm:$0xff]  ;;  %v57_v20 = vld [vmem:[#allocation5 + $0x60] sm:$0xff]  ;;  %p290_p2 = scmp.ne.s32.totalorder %s149_s12, %s289_s13  ;;  %p295_p4 = scmp.lt.s32.totalorder %s289_s13, %s289_s13 }
  0x2b   :  { %214 = vmatprep.subr.bf16.mxu0 %v321_v0  ;;  %v227_v19 = vpack.c.bf16 %v56_v18, %v55_v17  ;;  %v58_v21 = vld [vmem:[#allocation5 + $0x68] sm:$0xff]  ;;  %v41_v23 = vld [vmem:[#allocation2] sm:$0x3]  ;;  %v59_v24 = vld [vmem:[#allocation5 + $0x70] sm:$0xff] }
  0x2c   :  { %v230_v22 = vpack.c.bf16 %v58_v21, %v57_v20  ;;  %v60_v25 = vld [vmem:[#allocation5 + $0x78] sm:$0xff]  ;;  %v42_v26 = vunpack.c.l.bf16 %v41_v23  ;;  %p296_p5 = por %p295_p4, %p294_p3 }
  0x2d   :  { %v233_v27 = vpack.c.bf16 %v60_v25, %v59_v24  ;;  %v158_v33 = vld [vmem:[%s392_s1] ss:$0 sm:$0xff] }
  0x2e   :  { %216 = vmatpush3.bf16.msra.mxu0 %v215_v7  ;;  %v44_v28 = vmul.f32 %v42_v26, %v42_v26  ;;  %p297_p6 = pnand %p296_p5, %p290_p2 }
  0x2f   :  { %217 = vmatprep.subr.bf16.mxu0 %v321_v0 }
  0x32   :  { %219 = vmatpush3.bf16.msra.mxu0 %v218_v10 }
  0x33   :  { %220 = vmatprep.subr.bf16.mxu0 %v321_v0 }
  0x36   :  { %222 = vmatpush3.bf16.msra.mxu0 %v221_v13 }
  0x37   :  { %223 = vmatprep.subr.bf16.mxu0 %v321_v0 }
  0x3a   :  { %225 = vmatpush3.bf16.msra.mxu0 %v224_v16 }
  0x3b   :  { %226 = vmatprep.subr.bf16.mxu0 %v321_v0 }
  0x3e   :  { %228 = vmatpush3.bf16.msra.mxu0 %v227_v19 }
  0x3f   :  { %229 = vmatprep.subr.bf16.mxu0 %v321_v0 }
  0x42   :  { %231 = vmatpush3.bf16.msra.mxu0 %v230_v22 }
  0x43   :  { %232 = vmatprep.subr.bf16.mxu0 %v321_v0 }
  0x46   :  { %234 = vmatpush3.bf16.msra.mxu0 %v233_v27 }
  0x49   :  { %209 = vmatmul.mubr.f32.vlgmr.msra.gmra.mrb[0].mxu0 %v44_v28 }
 0x11c   :  { %v127_v29 = vpop.f32.mrb[0].mxu0 }
 0x11d   :  { %v128_v30 = vadd.f32 1e-06, %v127_v29  ;;  %v210_v31 = vpop.f32.mrb[1].mxu0 }
 0x11f   :  { %243 = vrsqrt.f32 %v128_v30 }
 0x129   :  { %v244_v32 = vpop.eup %243 }
 0x12a   :  { %v132_v34 = vmul.f32 %v244_v32, %v42_v26 }
 0x12c   :  { %v139_v35 = vmul.f32 %v158_v33, %v132_v34 }
 0x12e   :  { %v140_v36 = vpack.c.bf16 %v139_v35, %v139_v35 }
 0x130   :  { %141 = vst [vmem:[#allocation7] sm:$0x3] %v140_v36 }
 0x131   :  { %300 = shalt.err (!%p297_p6)
}
 0x132   :  { %s301_s16 = scalar_lea.hbm %s394_s3, 32 }
 0x133   :  { %p302_p7 = scmp.ne.s32.totalorder %s394_s3, %s301_s16  ;;  %p305_p8 = scmp.lt.u32.totalorder %s301_s16, %s394_s3 }
 0x135   :  { %p307_p9 = pnand %p305_p8, %p302_p7 }
 0x137   :  { %310 = shalt.err (!%p307_p9)
}
 0x138   :  { %151 = dma.vmem_to_hbm [thread:$0]  %s149_s12, 32, %s394_s3, [#allocation4]  }
 0x139   :  { %315 = dma.done.wait [#allocation4], 32  }
 0x13a   :  { %316 = vsyncadd [#allocation4], 4294967264 }
 0x13b   :  { %155 = vsyncpa [#allocation3], 1 }
 0x13c   :  { %156 = vsyncpa [#allocation6], 1 }
 0x13d   :  { %157 = vsyncpa [#allocation4], 1 }

</bundles_post_ra>
